<compile_context>
chip_gen: v7x
topology: tpu7x:2x2x1
jax: 0.10.0
libtpu: 0.0.40
codegen_flags: <defaults>
</compile_context>

<pallas_src>
import jax
import jax.numpy as jnp
from jax import lax
from jax.experimental import pallas as pl
from jax.experimental.pallas import tpu as pltpu


def _round_up(n, m):
    return ((n + m - 1) // m) * m


def _encoder_kernel(x_ref, cond_ref, ctab_ref,
                    w1x_ref, b1_ref,
                    w2_ref, b2_ref, w3_ref, b3_ref,
                    z_ref):
    tm = x_ref.shape[0]
    n_labels = ctab_ref.shape[0]

    # --- condition path: one-hot(bf16) @ (emb @ w1c) precomputed table ---
    cond = cond_ref[...]                                            # (tm, 1) int32
    labels = lax.broadcasted_iota(jnp.int32, (tm, n_labels), 1)     # (tm, n_labels)
    one_hot = (labels == cond).astype(jnp.bfloat16)                 # exact 0/1

    # --- linear_in over [x | cond_emb] + ELU (f32 accumulate / f32 EUP) ---
    h1 = (jnp.dot(x_ref[...], w1x_ref[...], preferred_element_type=jnp.float32)
          + jnp.dot(one_hot, ctab_ref[...], preferred_element_type=jnp.float32)
          + b1_ref[...])
    # ELU(alpha=1): x if x>0 else exp(x)-1.  No clamp: where() selects, inf in the
    # unselected branch is harmless in forward.  Padded lanes stay exactly 0.
    h1 = jnp.where(h1 > 0, h1, jnp.exp(h1) - 1.0)
    # dropout (eval mode) -> identity

    # --- linear_hidden + tanh ---
    h2 = jnp.dot(h1.astype(jnp.bfloat16), w2_ref[...],
                 preferred_element_type=jnp.float32) + b2_ref[...]
    h2 = jnp.tanh(h2)
    # dropout (eval mode) -> identity

    # --- linear_out (lane-dense padded output) ---
    z = jnp.dot(h2.astype(jnp.bfloat16), w3_ref[...],
                preferred_element_type=jnp.float32) + b3_ref[...]
    z_ref[...] = z.astype(z_ref.dtype)


def _pick_tm(B):
    """Batch tile: big lane-dense tiles, and >=2 grid steps when B allows (v7x)."""
    if B <= 8:
        return B                      # tiny batch: single full-array block
    return min(512, _round_up(pl.cdiv(B, 2), 8))


def caae_encoder_forward(x, condition, kparams, latent_dim):
    """x: (B, C, H, W), condition: (B,) int, kparams: packed params (see pack_params)."""
    B = x.shape[0]
    # bf16 x halves kernel HBM traffic; the cast fuses upstream under jit (no-op
    # if the producer already emits bf16).
    x_flat = x.reshape(B, -1)
    if x_flat.dtype != jnp.bfloat16:
        x_flat = x_flat.astype(jnp.bfloat16)
    cond = condition.reshape(B, 1).astype(jnp.int32)

    ctab = kparams["cond_table"]
    w1x, b1 = kparams["w1x"], kparams["b1"]
    w2, b2 = kparams["w2"], kparams["b2"]
    w3, b3 = kparams["w3"], kparams["b3"]
    in_dim = x_flat.shape[1]
    latent_pad = w3.shape[1]

    tm = _pick_tm(B)
    Bp = _round_up(B, tm)
    if Bp != B:  # pad batch so no grid step reads undefined trailing rows
        x_flat = jnp.pad(x_flat, ((0, Bp - B), (0, 0)))
        cond = jnp.pad(cond, ((0, Bp - B), (0, 0)))
    grid = (Bp // tm,)

    const = lambda i: (0, 0)   # weights: same block every step -> VMEM-resident
    tile = lambda i: (i, 0)    # batch-tiled activations

    z_pad = pl.pallas_call(
        _encoder_kernel,
        out_shape=jax.ShapeDtypeStruct((Bp, latent_pad), jnp.float32),
        grid_spec=pl.GridSpec(
            grid=grid,
            in_specs=[
                pl.BlockSpec((tm, in_dim), tile),    # x_flat (bf16)
                pl.BlockSpec((tm, 1), tile),         # condition ids
                pl.BlockSpec(ctab.shape, const),     # emb @ w1c table (bf16)
                pl.BlockSpec(w1x.shape, const),
                pl.BlockSpec(b1.shape, const),
                pl.BlockSpec(w2.shape, const),
                pl.BlockSpec(b2.shape, const),
                pl.BlockSpec(w3.shape, const),
                pl.BlockSpec(b3.shape, const),
            ],
            out_specs=pl.BlockSpec((tm, latent_pad), tile),
        ),
        compiler_params=pltpu.CompilerParams(
            dimension_semantics=("parallel",)),      # v7x: shard batch over 2 TCs
    )(x_flat, cond, ctab, w1x, b1, w2, b2, w3, b3)

    # TODO(synk): if the consumer accepts the padded (B, 128) bf16 buffer, drop
    # this slice (and the f32 output) to cut writeback traffic further.
    return z_pad[:B, :latent_dim]


def init_params(key, cond_emb_dim, in_dim, hidden_dim, latent_dim,
                n_condition_labels):
    """Logical (unsplit, unpadded, f32) parameters matching the PyTorch module."""
    ks = jax.random.split(key, 7)
    d_in = in_dim + cond_emb_dim

    def lin_init(kw, kb, fan_in, fan_out):
        bound = 1.0 / jnp.sqrt(fan_in)
        w = jax.random.uniform(kw, (fan_in, fan_out), jnp.float32, -bound, bound)
        b = jax.random.uniform(kb, (1, fan_out), jnp.float32, -bound, bound)
        return w, b

    emb = jax.random.normal(ks[0], (n_condition_labels, cond_emb_dim), jnp.float32)
    w1, b1 = lin_init(ks[1], ks[2], d_in, hidden_dim)
    w2, b2 = lin_init(ks[3], ks[4], hidden_dim, hidden_dim)
    w3, b3 = lin_init(ks[5], ks[6], hidden_dim, latent_dim)
    return dict(emb=emb, w1=w1, b1=b1, w2=w2, b2=b2, w3=w3, b3=b3)


def pack_params(p, in_dim):
    """Split w1, fold emb through the condition half, pad hidden/latent to 128
    lanes, cast weights to bf16."""
    hidden_dim = p["w2"].shape[0]
    latent_dim = p["w3"].shape[1]
    hp = _round_up(hidden_dim, 128)
    lp = _round_up(latent_dim, 128)

    def pad_cols(a, n):
        return jnp.pad(a, ((0, 0), (0, n - a.shape[1])))

    w1 = p["w1"]
    w1x = pad_cols(w1[:in_dim], hp).astype(jnp.bfloat16)           # (in_dim, hp)
    # Fold the embedding gather through linear_in's condition rows (f32 matmul,
    # then one bf16 rounding -- same rounding budget the kernel already pays).
    cond_table = pad_cols(jnp.dot(p["emb"], w1[in_dim:]), hp).astype(jnp.bfloat16)
    b1 = pad_cols(p["b1"], hp)                                     # f32
    w2 = jnp.pad(p["w2"], ((0, hp - hidden_dim),
                           (0, hp - hidden_dim))).astype(jnp.bfloat16)
    b2 = pad_cols(p["b2"], hp)
    w3 = jnp.pad(p["w3"], ((0, hp - hidden_dim),
                           (0, lp - latent_dim))).astype(jnp.bfloat16)
    b3 = pad_cols(p["b3"], lp)
    return dict(cond_table=cond_table, w1x=w1x, b1=b1,
                w2=w2, b2=b2, w3=w3, b3=b3)


def _reference_forward(x, condition, p):
    """Full-precision plain-JAX reference matching the PyTorch module semantics."""
    B = x.shape[0]
    x_flat = x.reshape(B, -1)
    cond_emb = p["emb"][condition]
    x_c = jnp.concatenate([x_flat, cond_emb], axis=-1)
    h1 = jnp.dot(x_c, p["w1"]) + p["b1"]
    h1 = jnp.where(h1 > 0, h1, jnp.expm1(h1))          # ELU(alpha=1)
    h2 = jnp.tanh(jnp.dot(h1, p["w2"]) + p["b2"])
    return jnp.dot(h2, p["w3"]) + p["b3"]


if __name__ == "__main__":
    key = jax.random.PRNGKey(0)
    k_x, k_c, k_p = jax.random.split(key, 3)

    # module hyperparameters (small, consistent with the forward pass)
    B, C, H, W = 2, 4, 16, 16
    in_dim = C * H * W          # x.flatten(1) -> 1024
    cond_emb_dim = 8
    hidden_dim = 32
    latent_dim = 16
    n_condition_labels = 10

    x = jax.random.normal(k_x, (B, C, H, W), jnp.float32)
    condition = jax.random.randint(k_c, (B,), 0, n_condition_labels, jnp.int32)

    params = init_params(k_p, cond_emb_dim, in_dim, hidden_dim, latent_dim,
                         n_condition_labels)
    kparams = pack_params(params, in_dim)

    z = caae_encoder_forward(x, condition, kparams, latent_dim)
    z = jax.block_until_ready(z)

    z_ref = _reference_forward(x, condition, params)
    assert z.shape == (B, latent_dim)
    assert jnp.allclose(z, z_ref, atol=3e-2, rtol=3e-2), "mismatch vs reference"
    print("KERNEL_OK")
</pallas_src>

<mosaic_0001>
module attributes {stable_mosaic.version = 11 : i64} {
  func.func @_encoder_kernel(%arg0: i32, %arg1: memref<2x1024xbf16, #tpu.memory_space<vmem>>, %arg2: memref<2x1xi32, #tpu.memory_space<vmem>>, %arg3: memref<10x128xbf16, #tpu.memory_space<vmem>>, %arg4: memref<1024x128xbf16, #tpu.memory_space<vmem>>, %arg5: memref<1x128xf32, #tpu.memory_space<vmem>>, %arg6: memref<128x128xbf16, #tpu.memory_space<vmem>>, %arg7: memref<1x128xf32, #tpu.memory_space<vmem>>, %arg8: memref<128x128xbf16, #tpu.memory_space<vmem>>, %arg9: memref<1x128xf32, #tpu.memory_space<vmem>>, %arg10: memref<2x128xf32, #tpu.memory_space<vmem>>) attributes {dimension_semantics = [#tpu.dimension_semantics<parallel>], iteration_bounds = array<i64: 1>, scalar_prefetch = 0 : i64, scratch_operands = 0 : i64, tpu.core_type = #tpu.core_type<tc>, window_params = [{transform_indices = @transform_0, window_bounds = array<i64: 2, 1024>}, {transform_indices = @transform_1, window_bounds = array<i64: 2, 1>}, {pipeline_mode = #tpu.pipeline_mode<synchronous>, transform_indices = @transform_2, window_bounds = array<i64: 10, 128>}, {pipeline_mode = #tpu.pipeline_mode<synchronous>, transform_indices = @transform_3, window_bounds = array<i64: 1024, 128>}, {pipeline_mode = #tpu.pipeline_mode<synchronous>, transform_indices = @transform_4, window_bounds = array<i64: 1, 128>}, {pipeline_mode = #tpu.pipeline_mode<synchronous>, transform_indices = @transform_5, window_bounds = array<i64: 128, 128>}, {pipeline_mode = #tpu.pipeline_mode<synchronous>, transform_indices = @transform_6, window_bounds = array<i64: 1, 128>}, {pipeline_mode = #tpu.pipeline_mode<synchronous>, transform_indices = @transform_7, window_bounds = array<i64: 128, 128>}, {pipeline_mode = #tpu.pipeline_mode<synchronous>, transform_indices = @transform_8, window_bounds = array<i64: 1, 128>}, {transform_indices = @transform_9, window_bounds = array<i64: 2, 128>}]} {
    %c0 = arith.constant 0 : index
    %c0_0 = arith.constant 0 : index
    %0 = vector.load %arg2[%c0, %c0_0] : memref<2x1xi32, #tpu.memory_space<vmem>>, vector<2x1xi32>
    %1 = tpu.iota {dimensions = array<i32: 1>} : vector<2x10xi32>
    %2 = vector.broadcast %0 : vector<2x1xi32> to vector<2x10xi32>
    %3 = arith.cmpi eq, %1, %2 : vector<2x10xi32>
    %4 = arith.extui %3 : vector<2x10xi1> to vector<2x10xi32>
    %5 = arith.sitofp %4 : vector<2x10xi32> to vector<2x10xf32>
    %6 = arith.truncf %5 : vector<2x10xf32> to vector<2x10xbf16>
    %c0_1 = arith.constant 0 : index
    %c0_2 = arith.constant 0 : index
    %7 = vector.load %arg1[%c0_1, %c0_2] : memref<2x1024xbf16, #tpu.memory_space<vmem>>, vector<2x1024xbf16>
    %c0_3 = arith.constant 0 : index
    %c0_4 = arith.constant 0 : index
    %8 = vector.load %arg4[%c0_3, %c0_4] : memref<1024x128xbf16, #tpu.memory_space<vmem>>, vector<1024x128xbf16>
    %cst = arith.constant dense<0.000000e+00> : vector<2x128xf32>
    %9 = tpu.matmul %7, %8, %cst {dimension_numbers = #tpu.dot_dimension_numbers<[1], [0], [0], [1], [0, 0, 1, 1], [], []>} : vector<2x1024xbf16>, vector<1024x128xbf16>, vector<2x128xf32> -> vector<2x128xf32>
    %c0_5 = arith.constant 0 : index
    %c0_6 = arith.constant 0 : index
    %10 = vector.load %arg3[%c0_5, %c0_6] : memref<10x128xbf16, #tpu.memory_space<vmem>>, vector<10x128xbf16>
    %cst_7 = arith.constant dense<0.000000e+00> : vector<2x128xf32>
    %11 = tpu.matmul %6, %10, %cst_7 {dimension_numbers = #tpu.dot_dimension_numbers<[1], [0], [0], [1], [0, 0, 1, 1], [], []>} : vector<2x10xbf16>, vector<10x128xbf16>, vector<2x128xf32> -> vector<2x128xf32>
    %12 = arith.addf %9, %11 : vector<2x128xf32>
    %c0_8 = arith.constant 0 : index
    %c0_9 = arith.constant 0 : index
    %13 = vector.load %arg5[%c0_8, %c0_9] : memref<1x128xf32, #tpu.memory_space<vmem>>, vector<1x128xf32>
    %14 = vector.broadcast %13 : vector<1x128xf32> to vector<2x128xf32>
    %15 = arith.addf %12, %14 : vector<2x128xf32>
    %cst_10 = arith.constant 0.000000e+00 : f32
    %16 = vector.broadcast %cst_10 : f32 to vector<2x128xf32>
    %17 = arith.cmpf ogt, %15, %16 : vector<2x128xf32>
    %18 = math.exp %15 : vector<2x128xf32>
    %cst_11 = arith.constant 1.000000e+00 : f32
    %19 = vector.broadcast %cst_11 : f32 to vector<2x128xf32>
    %20 = arith.subf %18, %19 : vector<2x128xf32>
    %21 = arith.select %17, %15, %20 : vector<2x128xi1>, vector<2x128xf32>
    %22 = arith.truncf %21 : vector<2x128xf32> to vector<2x128xbf16>
    %c0_12 = arith.constant 0 : index
    %c0_13 = arith.constant 0 : index
    %23 = vector.load %arg6[%c0_12, %c0_13] : memref<128x128xbf16, #tpu.memory_space<vmem>>, vector<128x128xbf16>
    %cst_14 = arith.constant dense<0.000000e+00> : vector<2x128xf32>
    %24 = tpu.matmul %22, %23, %cst_14 {dimension_numbers = #tpu.dot_dimension_numbers<[1], [0], [0], [1], [0, 0, 1, 1], [], []>} : vector<2x128xbf16>, vector<128x128xbf16>, vector<2x128xf32> -> vector<2x128xf32>
    %c0_15 = arith.constant 0 : index
    %c0_16 = arith.constant 0 : index
    %25 = vector.load %arg7[%c0_15, %c0_16] : memref<1x128xf32, #tpu.memory_space<vmem>>, vector<1x128xf32>
    %26 = vector.broadcast %25 : vector<1x128xf32> to vector<2x128xf32>
    %27 = arith.addf %24, %26 : vector<2x128xf32>
    %28 = math.tanh %27 : vector<2x128xf32>
    %29 = arith.truncf %28 : vector<2x128xf32> to vector<2x128xbf16>
    %c0_17 = arith.constant 0 : index
    %c0_18 = arith.constant 0 : index
    %30 = vector.load %arg8[%c0_17, %c0_18] : memref<128x128xbf16, #tpu.memory_space<vmem>>, vector<128x128xbf16>
    %cst_19 = arith.constant dense<0.000000e+00> : vector<2x128xf32>
    %31 = tpu.matmul %29, %30, %cst_19 {dimension_numbers = #tpu.dot_dimension_numbers<[1], [0], [0], [1], [0, 0, 1, 1], [], []>} : vector<2x128xbf16>, vector<128x128xbf16>, vector<2x128xf32> -> vector<2x128xf32>
    %c0_20 = arith.constant 0 : index
    %c0_21 = arith.constant 0 : index
    %32 = vector.load %arg9[%c0_20, %c0_21] : memref<1x128xf32, #tpu.memory_space<vmem>>, vector<1x128xf32>
    %33 = vector.broadcast %32 : vector<1x128xf32> to vector<2x128xf32>
    %34 = arith.addf %31, %33 : vector<2x128xf32>
    %c0_22 = arith.constant 0 : index
    %c0_23 = arith.constant 0 : index
    %35 = vector.load %arg10[%c0_22, %c0_23] : memref<2x128xf32, #tpu.memory_space<vmem>>, vector<2x128xf32>
    tpu.vector_store %arg10[%c0_22, %c0_23], %34 {strides = array<i32>} : memref<2x128xf32, #tpu.memory_space<vmem>>, vector<2x128xf32>,
    return
  }
  func.func @transform_0(%arg0: i32) -> (i32, i32) {
    %c0_i32 = arith.constant 0 : i32
    %c0_i32_0 = arith.constant 0 : i32
    return %arg0, %c0_i32 : i32, i32
  }
  func.func @transform_1(%arg0: i32) -> (i32, i32) {
    %c0_i32 = arith.constant 0 : i32
    %c0_i32_0 = arith.constant 0 : i32
    return %arg0, %c0_i32 : i32, i32
  }
  func.func @transform_2(%arg0: i32) -> (i32, i32) {
    %c0_i32 = arith.constant 0 : i32
    %c0_i32_0 = arith.constant 0 : i32
    %c0_i32_1 = arith.constant 0 : i32
    return %c0_i32, %c0_i32_0 : i32, i32
  }
  func.func @transform_3(%arg0: i32) -> (i32, i32) {
    %c0_i32 = arith.constant 0 : i32
    %c0_i32_0 = arith.constant 0 : i32
    %c0_i32_1 = arith.constant 0 : i32
    return %c0_i32, %c0_i32_0 : i32, i32
  }
  func.func @transform_4(%arg0: i32) -> (i32, i32) {
    %c0_i32 = arith.constant 0 : i32
    %c0_i32_0 = arith.constant 0 : i32
    %c0_i32_1 = arith.constant 0 : i32
    return %c0_i32, %c0_i32_0 : i32, i32
  }
  func.func @transform_5(%arg0: i32) -> (i32, i32) {
    %c0_i32 = arith.constant 0 : i32
    %c0_i32_0 = arith.constant 0 : i32
    %c0_i32_1 = arith.constant 0 : i32
    return %c0_i32, %c0_i32_0 : i32, i32
  }
  func.func @transform_6(%arg0: i32) -> (i32, i32) {
    %c0_i32 = arith.constant 0 : i32
    %c0_i32_0 = arith.constant 0 : i32
    %c0_i32_1 = arith.constant 0 : i32
    return %c0_i32, %c0_i32_0 : i32, i32
  }
  func.func @transform_7(%arg0: i32) -> (i32, i32) {
    %c0_i32 = arith.constant 0 : i32
    %c0_i32_0 = arith.constant 0 : i32
    %c0_i32_1 = arith.constant 0 : i32
    return %c0_i32, %c0_i32_0 : i32, i32
  }
  func.func @transform_8(%arg0: i32) -> (i32, i32) {
    %c0_i32 = arith.constant 0 : i32
    %c0_i32_0 = arith.constant 0 : i32
    %c0_i32_1 = arith.constant 0 : i32
    return %c0_i32, %c0_i32_0 : i32, i32
  }
  func.func @transform_9(%arg0: i32) -> (i32, i32) {
    %c0_i32 = arith.constant 0 : i32
    %c0_i32_0 = arith.constant 0 : i32
    return %arg0, %c0_i32 : i32, i32
  }
}

</mosaic_0001>

<bundles_post_ra>
// kernel: tpu_custom_call.1
= control target key start
LH: loop header
LB: loop body
LE: loop exit
PB: predicated region body
PF: predicated region fallthrough
CT: control target
= control target key end

     0   :  { %14 = vsyncpa [#allocation3], 0  ;;  %s1795_s0 = inlined_call_operand.hbm [shape: bf16[2,1024], index: 0, kind: input, shape index: {}]   ;;  %s1796_s1 = inlined_call_operand.vmem [shape: s32[2,1], index: 1, kind: input, shape index: {}]   ;;  %s1797_s2 = inlined_call_operand.vmem [shape: bf16[10,128], index: 2, kind: input, shape index: {}]   ;;  %s1798_s3 = inlined_call_operand.hbm [shape: bf16[1024,128], index: 3, kind: input, shape index: {}]   ;;  %s1799_s4 = inlined_call_operand.vmem [shape: f32[1,128], index: 4, kind: input, shape index: {}]   ;;  %s1800_s5 = inlined_call_operand.hbm [shape: bf16[128,128], index: 5, kind: input, shape index: {}]   ;;  %s1801_s6 = inlined_call_operand.vmem [shape: f32[1,128], index: 6, kind: input, shape index: {}]   ;;  %s1802_s7 = inlined_call_operand.hbm [shape: bf16[128,128], index: 7, kind: input, shape index: {}]   ;;  %s1803_s8 = inlined_call_operand.vmem [shape: f32[1,128], index: 8, kind: input, shape index: {}]   ;;  %s1804_s9 = inlined_call_operand.hbm [shape: f32[2,128], index: 9, kind: output, shape index: {}]  }
   0x1   :  { %15 = vsyncpa [#allocation6], 0 }
   0x2   :  { %16 = vsyncpa [#allocation9], 0 }
   0x3   :  { %17 = vsyncpa [#allocation4], 0  ;;  %s1596_s30 = smov [#allocation5]   ;;  %s1478_s13 = scalar_lea.hbm %s1798_s3, 8192 }
   0x4   :  { %s37_s10 = sshll.u32 %s1596_s30, 4  ;;  %p1479_p0 = scmp.ne.s32.totalorder %s1798_s3, %s1478_s13  ;;  %s38_s10 = int_to_ptr.vmem [resolvable:$true] %s37_s10 }
   0x5   :  { %p1482_p1 = scmp.lt.u32.totalorder %s1478_s13, %s1798_s3 }
   0x7   :  { %p1484_p2 = pnand %p1482_p1, %p1479_p0 }
   0x9   :  { %1487 = shalt.err (!%p1484_p2)
}
   0xa   :  { %s1488_s18 = scalar_lea.vmem %s38_s10, 8192  ;;  %p1493_p4 = scmp.lt.s32.totalorder %s38_s10, %s38_s10 }
   0xb   :  { %p1489_p3 = scmp.ne.s32.totalorder %s38_s10, %s1488_s18  ;;  %p1494_p5 = scmp.lt.s32.totalorder %s1488_s18, %s1488_s18 }
   0xd   :  { %p1495_p6 = por %p1494_p5, %p1493_p4 }
   0xf   :  { %p1496_p7 = pnand %p1495_p6, %p1489_p3 }
  0x11   :  { %1499 = shalt.err (!%p1496_p7)
}
  0x12   :  { %s1597_s19 = smov 64   ;;  %s1598_s20 = smov 4  }
  0x13   :  { %43 = dma.hbm_to_vmem [thread:$0]  %s1798_s3, 8192, %s38_s10, [#allocation6], %s1597_s19, %s1597_s19, %s1598_s20  }
  0x14   :  { %s1599_s23 = smov [#allocation2]   ;;  %s1600_s25 = smov [#allocation7]  }
  0x15   :  { %s24_s24 = sshll.u32 %s1599_s23, 4  ;;  %s51_s26 = sshll.u32 %s1600_s25, 4  ;;  %s25_s24 = int_to_ptr.vmem [resolvable:$true] %s24_s24  ;;  %s52_s26 = int_to_ptr.vmem [resolvable:$true] %s51_s26 }
  0x16   :  { %s1500_s29 = scalar_lea.hbm %s1795_s0, 128 }
  0x17   :  { %p1501_p8 = scmp.ne.s32.totalorder %s1795_s0, %s1500_s29  ;;  %p1504_p9 = scmp.lt.u32.totalorder %s1500_s29, %s1795_s0 }
  0x19   :  { %p1506_p10 = pnand %p1504_p9, %p1501_p8 }
  0x1b   :  { %1509 = shalt.err (!%p1506_p10)
}
  0x1c   :  { %s1510_s3 = scalar_lea.vmem %s25_s24, 128  ;;  %p1515_p12 = scmp.lt.s32.totalorder %s25_s24, %s25_s24 }
  0x1d   :  { %p1511_p11 = scmp.ne.s32.totalorder %s25_s24, %s1510_s3  ;;  %p1516_p13 = scmp.lt.s32.totalorder %s1510_s3, %s1510_s3 }
  0x1f   :  { %p1517_p0 = por %p1516_p13, %p1515_p12 }
  0x21   :  { %p1518_p1 = pnand %p1517_p0, %p1511_p11 }
  0x23   :  { %1521 = shalt.err (!%p1518_p1)
}
  0x24   :  { %27 = dma.hbm_to_vmem [thread:$0]  %s1795_s0, 128, %s25_s24, [#allocation3]  }
  0x25   :  { %s1522_s17 = scalar_lea.hbm %s1800_s5, 1024 }
  0x26   :  { %p1523_p2 = scmp.ne.s32.totalorder %s1800_s5, %s1522_s17  ;;  %p1526_p3 = scmp.lt.u32.totalorder %s1522_s17, %s1800_s5 }
  0x28   :  { %p1528_p4 = pnand %p1526_p3, %p1523_p2 }
  0x2a   :  { %1531 = shalt.err (!%p1528_p4)
}
  0x2b   :  { %s1532_s25 = scalar_lea.vmem %s52_s26, 1024  ;;  %p1537_p6 = scmp.lt.s32.totalorder %s52_s26, %s52_s26 }
  0x2c   :  { %p1533_p5 = scmp.ne.s32.totalorder %s52_s26, %s1532_s25  ;;  %p1538_p7 = scmp.lt.s32.totalorder %s1532_s25, %s1532_s25 }
  0x2e   :  { %p1539_p8 = por %p1538_p7, %p1537_p6 }
  0x30   :  { %p1540_p9 = pnand %p1539_p8, %p1533_p5 }
  0x32   :  { %1543 = shalt.err (!%p1540_p9)
}
  0x33   :  { %57 = dma.hbm_to_vmem [thread:$0]  %s1800_s5, 1024, %s52_s26, [#allocation6], %s1597_s19, %s1597_s19, %s1598_s20  }
  0x34   :  { %s1601_s27 = smov [#allocation8]   ;;  %s1544_s11 = scalar_lea.hbm %s1802_s7, 1024 }
  0x35   :  { %s65_s28 = sshll.u32 %s1601_s27, 4  ;;  %p1545_p10 = scmp.ne.s32.totalorder %s1802_s7, %s1544_s11  ;;  %s66_s28 = int_to_ptr.vmem [resolvable:$true] %s65_s28 }
  0x36   :  { %p1548_p11 = scmp.lt.u32.totalorder %s1544_s11, %s1802_s7 }
  0x38   :  { %p1550_p12 = pnand %p1548_p11, %p1545_p10 }
  0x3a   :  { %1553 = shalt.err (!%p1550_p12)
}
  0x3b   :  { %s1554_s14 = scalar_lea.vmem %s66_s28, 1024  ;;  %p1559_p0 = scmp.lt.s32.totalorder %s66_s28, %s66_s28 }
  0x3c   :  { %p1555_p13 = scmp.ne.s32.totalorder %s66_s28, %s1554_s14  ;;  %p1560_p1 = scmp.lt.s32.totalorder %s1554_s14, %s1554_s14 }
  0x3e   :  { %p1561_p2 = por %p1560_p1, %p1559_p0 }
  0x40   :  { %p1562_p3 = pnand %p1561_p2, %p1555_p13 }
  0x42   :  { %1565 = shalt.err (!%p1562_p3)
}
  0x43   :  { %71 = dma.hbm_to_vmem [thread:$0]  %s1802_s7, 1024, %s66_s28, [#allocation9], %s1597_s19, %s1597_s19, %s1598_s20  }
  0x44   :  { %1588 = dma.done.wait [#allocation3], 128  }
  0x45   :  { %1589 = vsyncadd [#allocation3], 4294967168 }
  0x46   :  { %1590 = dma.done.wait [#allocation6], 9216  }
  0x47   :  { %1591 = vsyncadd [#allocation6], 4294958080 }
  0x48   :  { %1592 = dma.done.wait [#allocation9], 1024  }
  0x49   :  { %1593 = vsyncadd [#allocation9], 4294966272  ;;  %v1602_v0 = vmov 0   ;;  %v1603_v1 = vmov 0.0   ;;  %v87_v2 = vld [vmem:[%s1796_s1] sm:$0x3]  ;;  %v88_v8 = vlaneseq }
  0x4a   :  { %1391 = vset.pattern.permute.xlu0 %v1602_v0  ;;  %1334 = vmatprep.subr.bf16.mxu0 %v1603_v1  ;;  %v1392_v3 = vld [vmem:[#allocation5 + $0x40] sm:$0xff]   ;;  %v1394_v5 = vld [vmem:[#allocation5 + $0x48] sm:$0xff]   ;;  %vm1604_vm0 = vmmov 0   ;;  %v1396_v7 = vld [vmem:[#allocation5 + $0x50] sm:$0xff]   ;;  %v1605_v9 = vmov 1966171168  }
  0x4b   :  { %91 = vperm.xlu0 %1391, %v87_v2   ;;  %v1393_v4 = vld [vmem:[#allocation5] sm:$0xff]   ;;  %1228 = vmatprep.subr.bf16.mxu1 %v1392_v3  ;;  %v1395_v6 = vld [vmem:[#allocation5 + $0x8] sm:$0xff]   ;;  %v284_v10 = vunpack.c.l.s4 %v1605_v9  ;;  %v1397_v11 = vld [vmem:[#allocation5 + $0x10] sm:$0xff]   ;;  %v287_v14 = vshrl.u32 %v88_v8, 7  ;;  %vm237_vm1 = vcmask 1044480   ;;  %v89_v54 = vand.u32 127, %v88_v8 }
  0x4c   :  { %1229 = vmatpush3.bf16.msra.mxu1 %v1393_v4  ;;  %1336 = vmatprep.mubr.msk.bf16.mxu0 %vm1604_vm0, %v1603_v1  ;;  %v1398_v12 = vld [vmem:[#allocation5 + $0x58] sm:$0xff]   ;;  %v1400_v16 = vld [vmem:[#allocation5 + $0x60] sm:$0xff]   ;;  %v1402_v19 = vld [vmem:[#allocation5 + $0x68] sm:$0xff]   ;;  %vm233_vm3 = vcmask 80896   ;;  %s1606_s21 = smov [#allocation10]  }
  0x4d   :  { %1230 = vmatprep.subr.bf16.mxu1 %v1394_v5  ;;  %v285_v13 = vunpack.c.0.s8 %v284_v10  ;;  %v1399_v15 = vld [vmem:[#allocation5 + $0x18] sm:$0xff]   ;;  %v1401_v18 = vld [vmem:[#allocation5 + $0x20] sm:$0xff]   ;;  %v1403_v25 = vld [vmem:[#allocation5 + $0x28] sm:$0xff]   ;;  %s1128_s22 = sshll.u32 %s1606_s21, 4  ;;  %s1129_s22 = int_to_ptr.vmem [resolvable:$true] %s1128_s22 }
  0x4e   :  { %v1408_v20 = vld [vmem:[%s1797_s2] sm:$0x1f]   ;;  %v1410_v23 = vld [vmem:[#allocation5 + $0xc0] sm:$0xff]   ;;  %v1404_v27 = vld [vmem:[#allocation5 + $0x70] sm:$0xff]   ;;  %p1571_p5 = scmp.lt.s32.totalorder %s1129_s22, %s1129_s22 }
  0x4f   :  { %v1721_v17 = vsub.s32 %v285_v13, %v287_v14  ;;  %v97_v21 = vld [vmem:[#allocation2] sm:$0xff]  ;;  %v239_v24 = vsel %vm237_vm1, %v1408_v20, 0  ;;  %v1405_v29 = vld [vmem:[#allocation5 + $0x30] sm:$0xff]   ;;  %v1412_v33 = vld [vmem:[#allocation5 + $0x140] sm:$0xff]  }
  0x50   :  { %1231 = vmatpush3.bf16.msra.mxu1 %v1395_v6  ;;  %1335 = vmatpush3.bf16.msra.mxu0 %v239_v24  ;;  %v1406_v30 = vld [vmem:[#allocation5 + $0x78] sm:$0xff]   ;;  %v282_v32 = vcombine.high %v97_v21, %v97_v21  ;;  %v1413_v35 = vld [vmem:[#allocation5 + $0x100] sm:$0xff]   ;;  %v1416_v37 = vld [vmem:[#allocation5 + $0x148] sm:$0xff]  }
  0x51   :  { %1232 = vmatprep.subr.bf16.mxu1 %v1396_v7  ;;  %v289_v22 = vrot.slane %v97_v21, %v1721_v17  ;;  %1250 = vmatprep.subr.bf16.mxu0 %v1410_v23  ;;  %v1407_v31 = vld [vmem:[#allocation5 + $0x38] sm:$0xff]   ;;  %v1417_v39 = vld [vmem:[#allocation5 + $0x108] sm:$0xff]   ;;  %v1420_v41 = vld [vmem:[#allocation5 + $0x150] sm:$0xff]  }
  0x52   :  { %v296_v36 = vrot.slane %v282_v32, %v1721_v17  ;;  %v1421_v42 = vld [vmem:[#allocation5 + $0x110] sm:$0xff]   ;;  %v1424_v43 = vld [vmem:[#allocation5 + $0x158] sm:$0xff]   ;;  %v1428_v45 = vld [vmem:[#allocation5 + $0x160] sm:$0xff]  }
  0x53   :  { %v297_v26 = vcombine.high %v289_v22, %v289_v22  ;;  %v1732_v34 = vrot.slane %v289_v22, %v1721_v17  ;;  %v1425_v44 = vld [vmem:[#allocation5 + $0x118] sm:$0xff]   ;;  %v1429_v46 = vld [vmem:[#allocation5 + $0x120] sm:$0xff]   ;;  %v1432_v47 = vld [vmem:[#allocation5 + $0x168] sm:$0xff]  }
  0x54   :  { %1233 = vmatpush3.bf16.msra.mxu1 %v1397_v11  ;;  %v298_v38 = vcombine.high %v296_v36, %v296_v36  ;;  %v1433_v48 = vld [vmem:[#allocation5 + $0x128] sm:$0xff]   ;;  %v1436_v49 = vld [vmem:[#allocation5 + $0x170] sm:$0xff]   ;;  %v1440_v51 = vld [vmem:[#allocation5 + $0x178] sm:$0xff]   ;;  %v1741_v53 = vrot.slane %v296_v36, %v1721_v17 }
  0x55   :  { %1234 = vmatprep.subr.bf16.mxu1 %v1398_v12  ;;  %v1728_v28 = vrot.slane %v297_v26, %v1721_v17  ;;  %v1437_v50 = vld [vmem:[#allocation5 + $0x130] sm:$0xff]   ;;  %v1441_v52 = vld [vmem:[#allocation5 + $0x138] sm:$0xff]   ;;  %v1411_v58 = vld [vmem:[#allocation5 + $0x80] sm:$0xff]   ;;  %v327_v12 = vcombine.high %v1732_v34, %v1732_v34 }
  0x56   :  { %v1737_v40 = vrot.slane %v298_v38, %v1721_v17  ;;  %v1414_v60 = vld [vmem:[#allocation5 + $0xc8] sm:$0xff]   ;;  %v1418_v62 = vld [vmem:[#allocation5 + $0xd0] sm:$0xff]   ;;  %v1422_v0 = vld [vmem:[#allocation5 + $0xd8] sm:$0xff]  }
  0x57   :  { %755 = vmatprep.mubr.bf16.mxu1 %v1728_v28  ;;  %v329_v57 = vcombine.high %v1728_v28, %v1728_v28  ;;  %v1415_v61 = vld [vmem:[#allocation5 + $0x88] sm:$0xff]   ;;  %v1419_v63 = vld [vmem:[#allocation5 + $0x90] sm:$0xff]   ;;  %v1423_v2 = vld [vmem:[#allocation5 + $0x98] sm:$0xff]  }
  0x58   :  { %1235 = vmatpush3.bf16.msra.mxu1 %v1399_v15  ;;  %v1426_v3 = vld [vmem:[#allocation5 + $0xe0] sm:$0xff]   ;;  %v1430_v5 = vld [vmem:[#allocation5 + $0xe8] sm:$0xff]   ;;  %v1434_v7 = vld [vmem:[#allocation5 + $0xf0] sm:$0xff]   ;;  %v330_v14 = vcombine.high %v1737_v40, %v1737_v40 }
  0x59   :  { %1236 = vmatprep.subr.bf16.mxu1 %v1400_v16  ;;  %v1427_v4 = vld [vmem:[#allocation5 + $0xa0] sm:$0xff]   ;;  %v1431_v6 = vld [vmem:[#allocation5 + $0xa8] sm:$0xff]   ;;  %v1435_v8 = vld [vmem:[#allocation5 + $0xb0] sm:$0xff]  }
  0x5a   :  { %v1438_v9 = vld [vmem:[#allocation5 + $0xf8] sm:$0xff]   ;;  %v1442_v11 = vld [vmem:[#allocation5 + $0x1c0] sm:$0xff]   ;;  %v1444_v15 = vld [vmem:[#allocation5 + $0x1c8] sm:$0xff]  }
  0x5b   :  { %v1439_v10 = vld [vmem:[#allocation5 + $0xb8] sm:$0xff]   ;;  %v1443_v13 = vld [vmem:[#allocation5 + $0x180] sm:$0xff]   ;;  %v1445_v16 = vld [vmem:[#allocation5 + $0x188] sm:$0xff]  }
  0x5c   :  { %1237 = vmatpush3.bf16.msra.mxu1 %v1401_v18  ;;  %v1446_v17 = vld [vmem:[#allocation5 + $0x1d0] sm:$0xff]   ;;  %v1449_v20 = vld [vmem:[#allocation5 + $0x198] sm:$0xff]   ;;  %v1450_v21 = vld [vmem:[#allocation5 + $0x1e0] sm:$0xff]  }
  0x5d   :  { %1238 = vmatprep.subr.bf16.mxu1 %v1402_v19  ;;  %v1447_v18 = vld [vmem:[#allocation5 + $0x190] sm:$0xff]   ;;  %v1448_v19 = vld [vmem:[#allocation5 + $0x1d8] sm:$0xff]   ;;  %v1451_v22 = vld [vmem:[#allocation5 + $0x1a0] sm:$0xff]  }
  0x5e   :  { %v1452_v23 = vld [vmem:[#allocation5 + $0x1e8] sm:$0xff]   ;;  %v1455_v26 = vld [vmem:[#allocation5 + $0x1b0] sm:$0xff]   ;;  %v1457_v28 = vld [vmem:[#allocation5 + $0x1b8] sm:$0xff]  }
  0x5f   :  { %v1453_v24 = vld [vmem:[#allocation5 + $0x1a8] sm:$0xff]  }
  0x60   :  { %1239 = vmatpush3.bf16.msra.mxu1 %v1403_v25  ;;  %v1454_v25 = vld [vmem:[#allocation5 + $0x1f0] sm:$0xff]   ;;  %v1459_v36 = vld [vmem:[#allocation7 + $0x8] sm:$0xff]  }
  0x61   :  { %1240 = vmatprep.subr.bf16.mxu1 %v1404_v27  ;;  %v1456_v27 = vld [vmem:[#allocation5 + $0x1f8] sm:$0xff]  }
  0x64   :  { %1241 = vmatpush3.bf16.msra.mxu1 %v1405_v29  ;;  %v328_v29 = vcombine.high %v1741_v53, %v1741_v53 }
  0x65   :  { %1242 = vmatprep.subr.bf16.mxu1 %v1406_v30 }
  0x68   :  { %1243 = vmatpush3.bf16.msra.mxu1 %v1407_v31 }
  0x69   :  { %1272 = vmatprep.subr.bf16.mxu1 %v1412_v33 }
  0x6b   :  { %756 = vmatmul.mubr.bf16.vlgmr.msra.gmra.mrb[0].mxu1 %v1732_v34 }
  0x6c   :  { %1273 = vmatpush3.bf16.msra.mxu1 %v1413_v35  ;;  %835 = vmatprep.mubr.bf16.mxu1 %v1737_v40  ;;  %v1458_v35 = vld [vmem:[#allocation7] sm:$0xff]  }
  0x6d   :  { %1274 = vmatprep.subr.bf16.mxu1 %v1416_v37 }
  0x70   :  { %1275 = vmatpush3.bf16.msra.mxu1 %v1417_v39 }
  0x71   :  { %1276 = vmatprep.subr.bf16.mxu1 %v1420_v41 }
  0x74   :  { %1277 = vmatpush3.bf16.msra.mxu1 %v1421_v42  ;;  %v1460_v42 = vld [vmem:[#allocation7 + $0x10] sm:$0xff]  }
  0x75   :  { %1278 = vmatprep.subr.bf16.mxu1 %v1424_v43  ;;  %v1461_v43 = vld [vmem:[#allocation7 + $0x18] sm:$0xff]  }
  0x78   :  { %1279 = vmatpush3.bf16.msra.mxu1 %v1425_v44  ;;  %v1462_v44 = vld [vmem:[#allocation7 + $0x20] sm:$0xff]  }
  0x79   :  { %1280 = vmatprep.subr.bf16.mxu1 %v1428_v45  ;;  %v1463_v45 = vld [vmem:[#allocation7 + $0x28] sm:$0xff]  }
  0x7c   :  { %1281 = vmatpush3.bf16.msra.mxu1 %v1429_v46  ;;  %v1464_v46 = vld [vmem:[#allocation7 + $0x30] sm:$0xff]  }
  0x7d   :  { %1282 = vmatprep.subr.bf16.mxu1 %v1432_v47  ;;  %v1465_v47 = vld [vmem:[#allocation7 + $0x38] sm:$0xff]  }
  0x80   :  { %1283 = vmatpush3.bf16.msra.mxu1 %v1433_v48  ;;  %v1466_v48 = vld [vmem:[#allocation8] sm:$0xff]  }
  0x81   :  { %1284 = vmatprep.subr.bf16.mxu1 %v1436_v49  ;;  %v1467_v49 = vld [vmem:[#allocation8 + $0x8] sm:$0xff]  }
  0x84   :  { %1285 = vmatpush3.bf16.msra.mxu1 %v1437_v50  ;;  %v1468_v50 = vld [vmem:[#allocation8 + $0x10] sm:$0xff]  }
  0x85   :  { %1286 = vmatprep.subr.bf16.mxu1 %v1440_v51  ;;  %v1469_v51 = vld [vmem:[#allocation8 + $0x18] sm:$0xff]  }
  0x88   :  { %1287 = vmatpush3.bf16.msra.mxu1 %v1441_v52 }
  0x89   :  { %1340 = vmatprep.subr.bf16.mxu1 %v1603_v1 }
  0x8b   :  { %836 = vmatmul.mubr.bf16.vlgmr.msra.gmra.mrb[4].mxu1 %v1741_v53 }
  0x8c   :  { %1356 = vmatprep.mubr.msk.bf16.mxu1 %vm1604_vm0, %v1603_v1  ;;  %1341 = vmatpush3.bf16.msra.mxu1 %v1458_v35 }
  0x8d   :  { %1342 = vmatprep.subr.bf16.mxu1 %v1603_v1 }
  0x90   :  { %1343 = vmatpush3.bf16.msra.mxu1 %v1459_v36 }
  0x91   :  { %1344 = vmatprep.subr.bf16.mxu1 %v1603_v1 }
  0x94   :  { %1345 = vmatpush3.bf16.msra.mxu1 %v1460_v42 }
  0x95   :  { %1346 = vmatprep.subr.bf16.mxu1 %v1603_v1 }
  0x98   :  { %1347 = vmatpush3.bf16.msra.mxu1 %v1461_v43 }
  0x99   :  { %1348 = vmatprep.subr.bf16.mxu1 %v1603_v1 }
  0x9c   :  { %1349 = vmatpush3.bf16.msra.mxu1 %v1462_v44 }
  0x9d   :  { %1350 = vmatprep.subr.bf16.mxu1 %v1603_v1 }
  0xa0   :  { %1351 = vmatpush3.bf16.msra.mxu1 %v1463_v45 }
  0xa1   :  { %1352 = vmatprep.subr.bf16.mxu1 %v1603_v1 }
  0xa4   :  { %1353 = vmatpush3.bf16.msra.mxu1 %v1464_v46 }
  0xa5   :  { %1354 = vmatprep.subr.bf16.mxu1 %v1603_v1 }
  0xa8   :  { %1355 = vmatpush3.bf16.msra.mxu1 %v1465_v47 }
  0xca   :  { %v92_v55 = vpop.permute.xlu0 %91 }
  0xcb   :  { %vm93_vm2 = vcmp.eq.s32.totalorder %v89_v54, %v92_v55 }
  0xcc   :  { %v1139_v56 = vsel %vm93_vm2, 1.0, %v1603_v1 }
  0xcd   :  { %v96_v59 = vpack.c.bf16 %v1139_v56, %v1139_v56 }
  0xcf   :  { %1337 = vmatmul.mubr.msk.bf16.vlgmr.msra.gmra.mrb[0].mxu0 %vm233_vm3, %v96_v59 }
  0xd0   :  { %1251 = vmatpush3.bf16.msra.mxu0 %v1411_v58  ;;  %795 = vmatprep.mubr.bf16.mxu0 %v329_v57 }
  0xd1   :  { %1252 = vmatprep.subr.bf16.mxu0 %v1414_v60 }
  0xd4   :  { %1253 = vmatpush3.bf16.msra.mxu0 %v1415_v61 }
  0xd5   :  { %1254 = vmatprep.subr.bf16.mxu0 %v1418_v62 }
  0xd8   :  { %1255 = vmatpush3.bf16.msra.mxu0 %v1419_v63 }
  0xd9   :  { %1256 = vmatprep.subr.bf16.mxu0 %v1422_v0 }
  0xdc   :  { %1257 = vmatpush3.bf16.msra.mxu0 %v1423_v2 }
  0xdd   :  { %1258 = vmatprep.subr.bf16.mxu0 %v1426_v3 }
  0xe0   :  { %1259 = vmatpush3.bf16.msra.mxu0 %v1427_v4 }
  0xe1   :  { %1260 = vmatprep.subr.bf16.mxu0 %v1430_v5  ;;  %v1206_v5 = vld [vmem:[%s1799_s4] ss:$0 sm:$0xff] }
  0xe4   :  { %1261 = vmatpush3.bf16.msra.mxu0 %v1431_v6 }
  0xe5   :  { %1262 = vmatprep.subr.bf16.mxu0 %v1434_v7 }
  0xe8   :  { %1263 = vmatpush3.bf16.msra.mxu0 %v1435_v8 }
  0xe9   :  { %1264 = vmatprep.subr.bf16.mxu0 %v1438_v9 }
  0xec   :  { %1265 = vmatpush3.bf16.msra.mxu0 %v1439_v10 }
  0xed   :  { %1294 = vmatprep.subr.bf16.mxu0 %v1442_v11 }
  0xef   :  { %796 = vmatmul.mubr.bf16.vlgmr.msra.gmra.mrb[4].mxu0 %v327_v12 }
  0xf0   :  { %1295 = vmatpush3.bf16.msra.mxu0 %v1443_v13  ;;  %875 = vmatprep.mubr.bf16.mxu0 %v330_v14  ;;  %v1470_v14 = vld [vmem:[#allocation8 + $0x20] sm:$0xff]  }
  0xf1   :  { %1296 = vmatprep.subr.bf16.mxu0 %v1444_v15  ;;  %v1471_v15 = vld [vmem:[#allocation8 + $0x28] sm:$0xff]  }
  0xf4   :  { %1297 = vmatpush3.bf16.msra.mxu0 %v1445_v16  ;;  %v1472_v16 = vld [vmem:[#allocation8 + $0x30] sm:$0xff]  }
  0xf5   :  { %1298 = vmatprep.subr.bf16.mxu0 %v1446_v17  ;;  %v1473_v17 = vld [vmem:[#allocation8 + $0x38] sm:$0xff]  }
  0xf8   :  { %1299 = vmatpush3.bf16.msra.mxu0 %v1447_v18  ;;  %v1208_v18 = vld [vmem:[%s1801_s6] ss:$0 sm:$0xff]  ;;  %s1566_s6 = scalar_lea.vmem %s1129_s22, 32 }
  0xf9   :  { %1300 = vmatprep.subr.bf16.mxu0 %v1448_v19  ;;  %p1567_p4 = scmp.ne.s32.totalorder %s1129_s22, %s1566_s6  ;;  %p1572_p6 = scmp.lt.s32.totalorder %s1566_s6, %s1566_s6 }
  0xfb   :  { %p1573_p7 = por %p1572_p6, %p1571_p5 }
  0xfc   :  { %1301 = vmatpush3.bf16.msra.mxu0 %v1449_v20 }
  0xfd   :  { %1302 = vmatprep.subr.bf16.mxu0 %v1450_v21  ;;  %p1574_p8 = pnand %p1573_p7, %p1567_p4 }
 0x100   :  { %1303 = vmatpush3.bf16.msra.mxu0 %v1451_v22 }
 0x101   :  { %1304 = vmatprep.subr.bf16.mxu0 %v1452_v23 }
 0x104   :  { %1305 = vmatpush3.bf16.msra.mxu0 %v1453_v24 }
 0x105   :  { %1306 = vmatprep.subr.bf16.mxu0 %v1454_v25 }
 0x108   :  { %1307 = vmatpush3.bf16.msra.mxu0 %v1455_v26  ;;  %v1217_v26 = vld [vmem:[%s1803_s8] ss:$0 sm:$0xff] }
 0x109   :  { %1308 = vmatprep.subr.bf16.mxu0 %v1456_v27 }
 0x10c   :  { %1309 = vmatpush3.bf16.msra.mxu0 %v1457_v28 }
 0x10d   :  { %1360 = vmatprep.subr.bf16.mxu0 %v1603_v1 }
 0x10f   :  { %876 = vmatmul.mubr.bf16.vlgmr.msra.gmra.mrb[8].mxu0 %v328_v29 }
 0x110   :  { %1376 = vmatprep.mubr.msk.bf16.mxu0 %vm1604_vm0, %v1603_v1  ;;  %1361 = vmatpush3.bf16.msra.mxu0 %v1466_v48 }
 0x111   :  { %1362 = vmatprep.subr.bf16.mxu0 %v1603_v1 }
 0x114   :  { %1363 = vmatpush3.bf16.msra.mxu0 %v1467_v49 }
 0x115   :  { %1364 = vmatprep.subr.bf16.mxu0 %v1603_v1 }
 0x118   :  { %1365 = vmatpush3.bf16.msra.mxu0 %v1468_v50 }
 0x119   :  { %1366 = vmatprep.subr.bf16.mxu0 %v1603_v1 }
 0x11c   :  { %1367 = vmatpush3.bf16.msra.mxu0 %v1469_v51 }
 0x11d   :  { %1368 = vmatprep.subr.bf16.mxu0 %v1603_v1 }
 0x120   :  { %1369 = vmatpush3.bf16.msra.mxu0 %v1470_v14 }
 0x121   :  { %1370 = vmatprep.subr.bf16.mxu0 %v1603_v1 }
 0x124   :  { %1371 = vmatpush3.bf16.msra.mxu0 %v1471_v15 }
 0x125   :  { %1372 = vmatprep.subr.bf16.mxu0 %v1603_v1 }
 0x128   :  { %1373 = vmatpush3.bf16.msra.mxu0 %v1472_v16 }
 0x129   :  { %1374 = vmatprep.subr.bf16.mxu0 %v1603_v1 }
 0x12c   :  { %1375 = vmatpush3.bf16.msra.mxu0 %v1473_v17 }
 0x13e   :  { %v1244_v30 = vpop.f32.mrb[0].mxu1 }
 0x13f   :  { %v1245_v31 = vpop.f32.mrb[1].mxu1 }
 0x140   :  { %v1246_v32 = vadd.f32 %v1245_v31, %v1244_v30  ;;  %v1247_v33 = vpop.f32.mrb[2].mxu1 }
 0x141   :  { %v1248_v34 = vpop.f32.mrb[3].mxu1 }
 0x15e   :  { %v1288_v37 = vpop.f32.mrb[4].mxu1 }
 0x15f   :  { %v1289_v38 = vpop.f32.mrb[5].mxu1 }
 0x160   :  { %v1290_v39 = vadd.f32 %v1289_v38, %v1288_v37  ;;  %v1291_v40 = vpop.f32.mrb[6].mxu1 }
 0x161   :  { %v1292_v41 = vpop.f32.mrb[7].mxu1 }
 0x1a2   :  { %v275_v52 = vpop.f32.mrb[0].mxu0 }
 0x1a3   :  { %v758_v53 = vadd.f32 %v1246_v32, %v275_v52  ;;  %v1338_v54 = vpop.f32.mrb[1].mxu0 }
 0x1a4   :  { %v278_v55 = vpop.f32.mrb[2].mxu0 }
 0x1a5   :  { %v1339_v56 = vpop.f32.mrb[3].mxu0 }
 0x1c2   :  { %v1266_v57 = vpop.f32.mrb[4].mxu0 }
 0x1c3   :  { %v1267_v58 = vpop.f32.mrb[5].mxu0 }
 0x1c4   :  { %v1268_v59 = vadd.f32 %v1267_v58, %v1266_v57  ;;  %v1269_v60 = vpop.f32.mrb[6].mxu0 }
 0x1c5   :  { %v1270_v61 = vpop.f32.mrb[7].mxu0 }
 0x1c6   :  { %v798_v62 = vadd.f32 %v1268_v59, %v758_v53 }
 0x1c8   :  { %v838_v63 = vadd.f32 %v1290_v39, %v798_v62 }
 0x1e2   :  { %v1310_v0 = vpop.f32.mrb[8].mxu0 }
 0x1e3   :  { %v1311_v2 = vpop.f32.mrb[9].mxu0 }
 0x1e4   :  { %v1312_v3 = vadd.f32 %v1311_v2, %v1310_v0  ;;  %v1313_v4 = vpop.f32.mrb[10].mxu0 }
 0x1e5   :  { %v1314_v6 = vpop.f32.mrb[11].mxu0 }
 0x1e6   :  { %v878_v7 = vadd.f32 %v1312_v3, %v838_v63 }
 0x1e8   :  { %v890_v8 = vadd.f32 %v1206_v5, %v878_v7 }
 0x1ea   :  { %v892_v9 = vmul.f32 1.442695, %v890_v8  ;;  %vm891_vm4 = vcmp.gt.f32.partialorder %v890_v8, 0.0 }
 0x1ec   :  { %1474 = vpow2.f32 %v892_v9 }
 0x1f6   :  { %v1475_v10 = vpop.eup %1474 }
 0x1f7   :  { %v1207_v11 = vadd.f32 -1.0, %v1475_v10 }
 0x1f9   :  { %v895_v12 = vsel %vm891_vm4, %v890_v8, %v1207_v11 }
 0x1fa   :  { %v896_v13 = vpack.c.bf16 %v895_v12, %v895_v12 }
 0x1fc   :  { %1357 = vmatmul.mubr.bf16.vlgmr.msra.gmra.mrb[8].mxu1 %v896_v13 }
 0x2cf   :  { %v1002_v19 = vpop.f32.mrb[8].mxu1 }
 0x2d0   :  { %v1003_v20 = vadd.f32 %v1208_v18, %v1002_v19  ;;  %v1358_v21 = vpop.f32.mrb[9].mxu1 }
 0x2d1   :  { %v1005_v22 = vpop.f32.mrb[10].mxu1 }
 0x2d2   :  { %1476 = vtanh.f32 %v1003_v20  ;;  %v1359_v23 = vpop.f32.mrb[11].mxu1 }
 0x2dc   :  { %v1477_v24 = vpop.eup %1476 }
 0x2dd   :  { %v1009_v25 = vpack.c.bf16 %v1477_v24, %v1477_v24 }
 0x2df   :  { %1377 = vmatmul.mubr.bf16.vlgmr.msra.gmra.mrb[12].mxu0 %v1009_v25 }
 0x3b2   :  { %v1115_v1 = vpop.f32.mrb[12].mxu0 }
 0x3b3   :  { %v1116_v27 = vadd.f32 %v1217_v26, %v1115_v1  ;;  %v1378_v28 = vpop.f32.mrb[13].mxu0 }
 0x3b4   :  { %v1118_v29 = vpop.f32.mrb[14].mxu0 }
 0x3b5   :  { %1121 = vst [vmem:[#allocation10] sm:$0x3] %v1116_v27  ;;  %v1379_v30 = vpop.f32.mrb[15].mxu0 }
 0x3b6   :  { %1577 = shalt.err (!%p1574_p8)
}
 0x3b7   :  { %s1578_s8 = scalar_lea.hbm %s1804_s9, 32 }
 0x3b8   :  { %p1579_p9 = scmp.ne.s32.totalorder %s1804_s9, %s1578_s8  ;;  %p1582_p10 = scmp.lt.u32.totalorder %s1578_s8, %s1804_s9 }
 0x3ba   :  { %p1584_p11 = pnand %p1582_p10, %p1579_p9 }
 0x3bc   :  { %1587 = shalt.err (!%p1584_p11)
}
 0x3bd   :  { %1131 = dma.vmem_to_hbm [thread:$0]  %s1129_s22, 32, %s1804_s9, [#allocation4]  }
 0x3be   :  { %1594 = dma.done.wait [#allocation4], 32  }
 0x3bf   :  { %1595 = vsyncadd [#allocation4], 4294967264 }
 0x3c0   :  { %1135 = vsyncpa [#allocation3], 1 }
 0x3c1   :  { %1136 = vsyncpa [#allocation6], 1 }
 0x3c2   :  { %1137 = vsyncpa [#allocation9], 1 }
 0x3c3   :  { %1138 = vsyncpa [#allocation4], 1 }

</bundles_post_ra>
